<compile_context>
chip_gen: v6e
topology: v6e:2x2x1
jax: 0.10.0
libtpu: 0.0.40
codegen_flags: <defaults>
</compile_context>

<pallas_src>
import functools

import numpy as np
import jax
import jax.numpy as jnp
from jax import lax
from jax.experimental import pallas as pl
from jax.experimental.pallas import tpu as pltpu


_SEGS = 8                   # segments per grid step (sublane-dense out block)
_LANE = 128                 # lane width
_NEG = float(np.finfo(np.float32).min)


def _round_up(v, m):
    return -(-int(v) // m) * m


def _dmax_kernel(starts_ref, vlens_ref, x_hbm, o_ref, buf, sem, *,
                 max_rows, span_rows, steps_per_core):
    """One grid step: reduce 8 contiguous segments into an (8, Dp) block.

    starts_ref, vlens_ref: SMEM int32[B_pad]        (scalar-prefetched)
    x_hbm:                 HBM  f32[N_pad, Dp]      (raw ref, manual DMA)
    o_ref:                 VMEM f32[8, Dp]
    buf:                   VMEM f32[2*span_rows, Dp] (flat double buffer)
    sem:                   DMA semaphores (2,)
    """
    c = pl.program_id(0)                 # core split (v7x megacore)
    t = pl.program_id(1)                 # sequential steps on this core
    step = c * steps_per_core + t
    slot = lax.rem(t, 2)

    def span_copy(hbm_row, slot_idx):
        return pltpu.make_async_copy(
            x_hbm.at[pl.ds(hbm_row, span_rows)],
            buf.at[pl.ds(slot_idx * span_rows, span_rows)],
            sem.at[slot_idx])

    # Prime the pipeline at the first step of this core's sequence.
    @pl.when(t == 0)
    def _():
        span_copy(starts_ref[step * _SEGS], slot).start()

    # Cross-step prefetch: fetch next step's span into the other slot while
    # this step reduces (hides the per-step DMA latency).
    if steps_per_core > 1:
        @pl.when(t + 1 < steps_per_core)
        def _():
            span_copy(starts_ref[(step + 1) * _SEGS], 1 - slot).start()

    # Hoist all SMEM scalar reads above the wait (.wait() breaks sst->sld fwd).
    base = step * _SEGS
    span_start = starts_ref[base]
    locs = [starts_ref[base + j] - span_start for j in range(_SEGS)]
    lens = [vlens_ref[base + j] for j in range(_SEGS)]

    # Wait for this step's span (issued by the previous step, or primed above).
    span_copy(0, slot).wait()

    row_ids = lax.broadcasted_iota(jnp.int32, (max_rows, 1), 0)
    clamp_hi = span_rows - max_rows          # >= 0 by construction
    buf_base = slot * span_rows

    for j in range(_SEGS):                   # static unroll; store as we go
        # Clamp the window start so the slice stays inside the span buffer;
        # shift the row mask by the clamp amount (loc + vlen <= span_rows, so
        # the wanted rows always remain inside the max_rows window).
        loc_c = jnp.minimum(locs[j], clamp_hi)
        rel = row_ids - (locs[j] - loc_c)
        window = buf[pl.ds(buf_base + loc_c, max_rows), :]
        vals = jnp.where((rel >= 0) & (rel < lens[j]), window, _NEG)
        o_ref[pl.ds(j, 1), :] = jnp.max(vals, axis=0, keepdims=True)


def dmax_forward(x, sizes, window_size, dimension=0):
    """Pallas implementation of DMax.forward.

    x:      float32 [N_total, D]
    sizes:  int32   [B]  (concrete; drives static tiling, like the PyTorch
                          module's host-side loop over sizes)
    returns float32 [B, D]
    """
    if dimension != 0:
        # TODO(synk): dimension != 0 in the original module is shape-
        # inconsistent with its own output buffer; only dimension=0 supported.
        raise NotImplementedError("Only dimension=0 is supported.")

    x = jnp.asarray(x, jnp.float32)
    n_total, d = x.shape

    # Concrete sizes drive static tiling (mirrors the torch host-side loop).
    # TODO(synk): accept device-resident sizes plus a static max-size hint to
    # avoid this host sync when sizes already live on device.
    sizes_np = np.asarray(jax.device_get(sizes)).astype(np.int64).reshape(-1)
    b = int(sizes_np.shape[0])

    starts_np = np.zeros(b, dtype=np.int64)
    if b > 1:
        starts_np[1:] = np.cumsum(sizes_np)[:-1]
    # Segments shorter than the window reduce over their first row instead of
    # erroring (divergence from torch, which raises on the empty slice).
    vlens_np = np.maximum(sizes_np - (window_size - 1), 1)

    # Pad the segment count so every grid point owns a dense block of 8
    # segments and the grid splits evenly across 2 TensorCores (v7x).
    b_pad = max(16, _round_up(b, 2 * _SEGS))
    pad = b_pad - b
    starts_np = np.concatenate([starts_np, np.full(pad, n_total, dtype=np.int64)])
    sizes_pad = np.concatenate([sizes_np, np.zeros(pad, dtype=np.int64)])
    vlens_np = np.concatenate([vlens_np, np.ones(pad, dtype=np.int64)])

    n_steps = b_pad // _SEGS
    steps_per_core = n_steps // 2

    # Per-step contiguous span: the 8 segments of one step are contiguous in
    # HBM, so one DMA of span_rows rows covers all of them.
    ends = starts_np + sizes_pad
    span_actual = ends[_SEGS - 1::_SEGS] - starts_np[::_SEGS]
    max_rows = max(8, _round_up(int(vlens_np.max()), 8))
    span_rows = max(max_rows, _round_up(int(span_actual.max()), 8))
    # TODO(synk): for heavily skewed segment sizes, per-step row balancing
    # across the two v7x cores conflicts with the contiguous-span DMA; a
    # bucketed multi-call scheme would address both.

    # Lane-dense feature dim; pad rows so start + span_rows never runs off.
    dp = _round_up(d, _LANE)
    x = jnp.pad(x, ((0, span_rows), (0, dp - d)))

    starts = jnp.asarray(starts_np.astype(np.int32))
    vlens = jnp.asarray(vlens_np.astype(np.int32))

    # VMEM budget: flat double buffer + double-buffered (8, Dp) out block.
    buf_bytes = 2 * span_rows * dp * 4
    out_bytes = 2 * _SEGS * dp * 4
    need = buf_bytes + out_bytes + (2 << 20)
    try:
        vmem_cap = int(pltpu.get_tpu_info().vmem_capacity_bytes)
    except Exception:
        vmem_cap = 64 << 20            # v7x per-core floor
    budget = vmem_cap - (8 << 20)
    if need > budget:
        # TODO(synk): stream fixed-size row chunks with a running max (and/or
        # tile the feature dim) when one step's span does not fit VMEM.
        raise NotImplementedError(
            f"DMax span buffer needs {need / 2**20:.1f} MiB of VMEM but only "
            f"{budget / 2**20:.1f} MiB is budgeted; row-chunked streaming is "
            "not implemented.")
    vmem_limit = int(min(budget, max(16 << 20, need)))

    cost = pl.CostEstimate(
        flops=int(4 * b_pad * max_rows * dp),
        transcendentals=0,
        bytes_accessed=int(n_steps * span_rows * dp * 4 + b_pad * dp * 4),
    )

    kernel = functools.partial(
        _dmax_kernel, max_rows=max_rows, span_rows=span_rows,
        steps_per_core=steps_per_core)

    out = pl.pallas_call(
        kernel,
        out_shape=jax.ShapeDtypeStruct((b_pad, dp), jnp.float32),
        grid_spec=pltpu.PrefetchScalarGridSpec(
            num_scalar_prefetch=2,
            grid=(2, steps_per_core),
            in_specs=[pl.BlockSpec(memory_space=pl.ANY)],
            out_specs=pl.BlockSpec(
                (_SEGS, dp),
                lambda c, t, starts, vlens: (c * steps_per_core + t, 0)),
            scratch_shapes=[
                pltpu.VMEM((2 * span_rows, dp), jnp.float32),
                pltpu.SemaphoreType.DMA((2,)),
            ],
        ),
        compiler_params=pltpu.CompilerParams(
            dimension_semantics=("parallel", "arbitrary"),
            vmem_limit_bytes=vmem_limit,
        ),
        cost_estimate=cost,
    )(starts, vlens, x)

    return out[:b, :d]


def _dmax_reference(x, sizes, window_size):
    x = np.asarray(x)
    sizes = np.asarray(sizes)
    starts = np.concatenate([[0], np.cumsum(sizes)[:-1]])
    rows = []
    for s, sz in zip(starts, sizes):
        n = max(int(sz) - window_size + 1, 1)
        rows.append(np.max(x[s:s + n], axis=0))
    return np.stack(rows, axis=0)


if __name__ == "__main__":
    key = jax.random.PRNGKey(0)
    k1, k2 = jax.random.split(key)

    # Case 1: 6 variable-length segments, D = 128.
    window_size = 3
    sizes_np = np.array([9, 7, 8, 12, 5, 10], dtype=np.int32)   # N_total = 51
    n_total = int(sizes_np.sum())
    d = 128
    x = jax.random.normal(k1, (n_total, d), dtype=jnp.float32)
    out = jax.block_until_ready(
        dmax_forward(x, jnp.asarray(sizes_np), window_size, dimension=0))
    ref = _dmax_reference(np.asarray(x), sizes_np, window_size)
    np.testing.assert_allclose(np.asarray(out), ref, rtol=1e-6, atol=1e-6)

    # Case 2: more segments, non-128-multiple feature dim (exercises feature
    # padding, window clamping inside the span buffer, and padded final steps).
    window_size2 = 4
    rng = np.random.RandomState(0)
    sizes2_np = rng.randint(window_size2, 21, size=37).astype(np.int32)
    n2 = int(sizes2_np.sum())
    d2 = 100
    x2 = jax.random.normal(k2, (n2, d2), dtype=jnp.float32)
    out2 = jax.block_until_ready(
        dmax_forward(x2, jnp.asarray(sizes2_np), window_size2, dimension=0))
    ref2 = _dmax_reference(np.asarray(x2), sizes2_np, window_size2)
    np.testing.assert_allclose(np.asarray(out2), ref2, rtol=1e-6, atol=1e-6)

    print("KERNEL_OK")
</pallas_src>

<mosaic_0001>
module attributes {stable_mosaic.version = 11 : i64} {
  func.func @_dmax_kernel(%arg0: i32, %arg1: i32, %arg2: memref<16xi32, #tpu.memory_space<smem>>, %arg3: memref<16xi32, #tpu.memory_space<smem>>, %arg4: memref<107x128xf32, #tpu.memory_space<any>>, %arg5: memref<8x128xf32, #tpu.memory_space<vmem>>, %arg6: memref<112x128xf32, #tpu.memory_space<vmem>>, %arg7: memref<2x!tpu.dma_semaphore, #tpu.memory_space<semaphore_mem>>) attributes {dimension_semantics = [#tpu.dimension_semantics<parallel>, #tpu.dimension_semantics<arbitrary>], iteration_bounds = array<i64: 2, 1>, scalar_prefetch = 2 : i64, scratch_operands = 2 : i64, tpu.core_type = #tpu.core_type<tc>, window_params = [{}, {transform_indices = @transform_1, window_bounds = array<i64: 8, 128>}]} {
    %c1_i32 = arith.constant 1 : i32
    %0 = arith.muli %arg0, %c1_i32 : i32
    %1 = arith.addi %0, %arg1 : i32
    %c2_i32 = arith.constant 2 : i32
    %2 = arith.remsi %arg1, %c2_i32 : i32
    %c0_i32 = arith.constant 0 : i32
    %3 = arith.cmpi eq, %arg1, %c0_i32 : i32
    %4 = arith.extui %3 : i1 to i32
    %c0_i32_0 = arith.constant 0 : i32
    %5 = arith.cmpi ne, %4, %c0_i32_0 : i32
    scf.if %5 {
      %c8_i32_62 = arith.constant 8 : i32
      %224 = arith.muli %1, %c8_i32_62 : i32
      %225 = arith.index_cast %224 : i32 to index
      %226 = memref.load %arg2[%225] : memref<16xi32, #tpu.memory_space<smem>>
      %c56_i32_63 = arith.constant 56 : i32
      %227 = arith.muli %2, %c56_i32_63 : i32
      %c0_i32_64 = arith.constant 0 : i32
      %228 = tpu.memref_slice %arg4[%226, %c0_i32_64] : memref<107x128xf32, #tpu.memory_space<any>> -> memref<56x128xf32, #tpu.memory_space<any>>
      %c0_i32_65 = arith.constant 0 : i32
      %229 = tpu.memref_slice %arg6[%227, %c0_i32_65] : memref<112x128xf32, #tpu.memory_space<vmem>> -> memref<56x128xf32, #tpu.memory_space<vmem>>
      %230 = tpu.memref_slice %arg7[%2] : memref<2x!tpu.dma_semaphore, #tpu.memory_space<semaphore_mem>> -> memref<1x!tpu.dma_semaphore, #tpu.memory_space<semaphore_mem>>
      %231 = tpu.memref_squeeze %230 : memref<1x!tpu.dma_semaphore, #tpu.memory_space<semaphore_mem>> -> memref<!tpu.dma_semaphore, #tpu.memory_space<semaphore_mem>>
      tpu.enqueue_dma source(%228 : memref<56x128xf32, #tpu.memory_space<any>>) target(%229 : memref<56x128xf32, #tpu.memory_space<vmem>>) target_semaphore(%231 : memref<!tpu.dma_semaphore, #tpu.memory_space<semaphore_mem>>)
    } else {
    }
    %c8_i32 = arith.constant 8 : i32
    %6 = arith.muli %1, %c8_i32 : i32
    %7 = arith.index_cast %6 : i32 to index
    %8 = memref.load %arg2[%7] : memref<16xi32, #tpu.memory_space<smem>>
    %c0_i32_1 = arith.constant 0 : i32
    %9 = arith.addi %6, %c0_i32_1 : i32
    %10 = arith.index_cast %9 : i32 to index
    %11 = memref.load %arg2[%10] : memref<16xi32, #tpu.memory_space<smem>>
    %12 = arith.subi %11, %8 : i32
    %c1_i32_2 = arith.constant 1 : i32
    %13 = arith.addi %6, %c1_i32_2 : i32
    %14 = arith.index_cast %13 : i32 to index
    %15 = memref.load %arg2[%14] : memref<16xi32, #tpu.memory_space<smem>>
    %16 = arith.subi %15, %8 : i32
    %c2_i32_3 = arith.constant 2 : i32
    %17 = arith.addi %6, %c2_i32_3 : i32
    %18 = arith.index_cast %17 : i32 to index
    %19 = memref.load %arg2[%18] : memref<16xi32, #tpu.memory_space<smem>>
    %20 = arith.subi %19, %8 : i32
    %c3_i32 = arith.constant 3 : i32
    %21 = arith.addi %6, %c3_i32 : i32
    %22 = arith.index_cast %21 : i32 to index
    %23 = memref.load %arg2[%22] : memref<16xi32, #tpu.memory_space<smem>>
    %24 = arith.subi %23, %8 : i32
    %c4_i32 = arith.constant 4 : i32
    %25 = arith.addi %6, %c4_i32 : i32
    %26 = arith.index_cast %25 : i32 to index
    %27 = memref.load %arg2[%26] : memref<16xi32, #tpu.memory_space<smem>>
    %28 = arith.subi %27, %8 : i32
    %c5_i32 = arith.constant 5 : i32
    %29 = arith.addi %6, %c5_i32 : i32
    %30 = arith.index_cast %29 : i32 to index
    %31 = memref.load %arg2[%30] : memref<16xi32, #tpu.memory_space<smem>>
    %32 = arith.subi %31, %8 : i32
    %c6_i32 = arith.constant 6 : i32
    %33 = arith.addi %6, %c6_i32 : i32
    %34 = arith.index_cast %33 : i32 to index
    %35 = memref.load %arg2[%34] : memref<16xi32, #tpu.memory_space<smem>>
    %36 = arith.subi %35, %8 : i32
    %c7_i32 = arith.constant 7 : i32
    %37 = arith.addi %6, %c7_i32 : i32
    %38 = arith.index_cast %37 : i32 to index
    %39 = memref.load %arg2[%38] : memref<16xi32, #tpu.memory_space<smem>>
    %40 = arith.subi %39, %8 : i32
    %c0_i32_4 = arith.constant 0 : i32
    %41 = arith.addi %6, %c0_i32_4 : i32
    %42 = arith.index_cast %41 : i32 to index
    %43 = memref.load %arg3[%42] : memref<16xi32, #tpu.memory_space<smem>>
    %c1_i32_5 = arith.constant 1 : i32
    %44 = arith.addi %6, %c1_i32_5 : i32
    %45 = arith.index_cast %44 : i32 to index
    %46 = memref.load %arg3[%45] : memref<16xi32, #tpu.memory_space<smem>>
    %c2_i32_6 = arith.constant 2 : i32
    %47 = arith.addi %6, %c2_i32_6 : i32
    %48 = arith.index_cast %47 : i32 to index
    %49 = memref.load %arg3[%48] : memref<16xi32, #tpu.memory_space<smem>>
    %c3_i32_7 = arith.constant 3 : i32
    %50 = arith.addi %6, %c3_i32_7 : i32
    %51 = arith.index_cast %50 : i32 to index
    %52 = memref.load %arg3[%51] : memref<16xi32, #tpu.memory_space<smem>>
    %c4_i32_8 = arith.constant 4 : i32
    %53 = arith.addi %6, %c4_i32_8 : i32
    %54 = arith.index_cast %53 : i32 to index
    %55 = memref.load %arg3[%54] : memref<16xi32, #tpu.memory_space<smem>>
    %c5_i32_9 = arith.constant 5 : i32
    %56 = arith.addi %6, %c5_i32_9 : i32
    %57 = arith.index_cast %56 : i32 to index
    %58 = memref.load %arg3[%57] : memref<16xi32, #tpu.memory_space<smem>>
    %c6_i32_10 = arith.constant 6 : i32
    %59 = arith.addi %6, %c6_i32_10 : i32
    %60 = arith.index_cast %59 : i32 to index
    %61 = memref.load %arg3[%60] : memref<16xi32, #tpu.memory_space<smem>>
    %c7_i32_11 = arith.constant 7 : i32
    %62 = arith.addi %6, %c7_i32_11 : i32
    %63 = arith.index_cast %62 : i32 to index
    %64 = memref.load %arg3[%63] : memref<16xi32, #tpu.memory_space<smem>>
    %c56_i32 = arith.constant 56 : i32
    %65 = arith.muli %2, %c56_i32 : i32
    %c0_i32_12 = arith.constant 0 : i32
    %c0_i32_13 = arith.constant 0 : i32
    %66 = tpu.memref_slice %arg4[%c0_i32_12, %c0_i32_13] : memref<107x128xf32, #tpu.memory_space<any>> -> memref<56x128xf32, #tpu.memory_space<any>>
    %c0_i32_14 = arith.constant 0 : i32
    %67 = tpu.memref_slice %arg6[%65, %c0_i32_14] : memref<112x128xf32, #tpu.memory_space<vmem>> -> memref<56x128xf32, #tpu.memory_space<vmem>>
    %68 = tpu.memref_slice %arg7[%2] : memref<2x!tpu.dma_semaphore, #tpu.memory_space<semaphore_mem>> -> memref<1x!tpu.dma_semaphore, #tpu.memory_space<semaphore_mem>>
    %69 = tpu.memref_squeeze %68 : memref<1x!tpu.dma_semaphore, #tpu.memory_space<semaphore_mem>> -> memref<!tpu.dma_semaphore, #tpu.memory_space<semaphore_mem>>
    tpu.wait_dma2 semaphore(%69 : memref<!tpu.dma_semaphore, #tpu.memory_space<semaphore_mem>>) src(%66 : memref<56x128xf32, #tpu.memory_space<any>>) dst(%67 : memref<56x128xf32, #tpu.memory_space<vmem>>)
    %70 = tpu.iota {dimensions = array<i32: 0>} : vector<16x1xi32>
    %c56_i32_15 = arith.constant 56 : i32
    %71 = arith.muli %2, %c56_i32_15 : i32
    %c40_i32 = arith.constant 40 : i32
    %72 = arith.minsi %12, %c40_i32 : i32
    %73 = arith.subi %12, %72 : i32
    %74 = vector.broadcast %73 : i32 to vector<16x1xi32>
    %75 = arith.subi %70, %74 : vector<16x1xi32>
    %76 = arith.addi %71, %72 : i32
    %77 = arith.index_cast %76 : i32 to index
    %c0 = arith.constant 0 : index
    %78 = vector.load %arg6[%77, %c0] : memref<112x128xf32, #tpu.memory_space<vmem>>, vector<16x128xf32>
    %c0_i32_16 = arith.constant 0 : i32
    %79 = vector.broadcast %c0_i32_16 : i32 to vector<16x1xi32>
    %80 = arith.cmpi sge, %75, %79 : vector<16x1xi32>
    %81 = vector.broadcast %43 : i32 to vector<16x1xi32>
    %82 = arith.cmpi slt, %75, %81 : vector<16x1xi32>
    %83 = arith.andi %80, %82 : vector<16x1xi1>
    %cst = arith.constant -3.40282347E+38 : f32
    %84 = vector.shape_cast %83 : vector<16x1xi1> to vector<16x1xi1>
    %85 = vector.broadcast %84 : vector<16x1xi1> to vector<16x128xi1>
    %86 = vector.broadcast %cst : f32 to vector<16x128xf32>
    %87 = arith.select %85, %78, %86 : vector<16x128xi1>, vector<16x128xf32>
    %cst_17 = arith.constant dense<0xFF800000> : vector<128xf32>
    %88 = vector.multi_reduction <maximumf>, %87, %cst_17 [0] : vector<16x128xf32> to vector<128xf32>
    %89 = vector.shape_cast %88 : vector<128xf32> to vector<1x128xf32>
    %c0_18 = arith.constant 0 : index
    %c0_19 = arith.constant 0 : index
    %90 = vector.load %arg5[%c0_18, %c0_19] : memref<8x128xf32, #tpu.memory_space<vmem>>, vector<1x128xf32>
    tpu.vector_store %arg5[%c0_18, %c0_19], %89 {strides = array<i32>} : memref<8x128xf32, #tpu.memory_space<vmem>>, vector<1x128xf32>,
    %c40_i32_20 = arith.constant 40 : i32
    %91 = arith.minsi %16, %c40_i32_20 : i32
    %92 = arith.subi %16, %91 : i32
    %93 = vector.broadcast %92 : i32 to vector<16x1xi32>
    %94 = arith.subi %70, %93 : vector<16x1xi32>
    %95 = arith.addi %71, %91 : i32
    %96 = arith.index_cast %95 : i32 to index
    %c0_21 = arith.constant 0 : index
    %97 = vector.load %arg6[%96, %c0_21] : memref<112x128xf32, #tpu.memory_space<vmem>>, vector<16x128xf32>
    %c0_i32_22 = arith.constant 0 : i32
    %98 = vector.broadcast %c0_i32_22 : i32 to vector<16x1xi32>
    %99 = arith.cmpi sge, %94, %98 : vector<16x1xi32>
    %100 = vector.broadcast %46 : i32 to vector<16x1xi32>
    %101 = arith.cmpi slt, %94, %100 : vector<16x1xi32>
    %102 = arith.andi %99, %101 : vector<16x1xi1>
    %cst_23 = arith.constant -3.40282347E+38 : f32
    %103 = vector.shape_cast %102 : vector<16x1xi1> to vector<16x1xi1>
    %104 = vector.broadcast %103 : vector<16x1xi1> to vector<16x128xi1>
    %105 = vector.broadcast %cst_23 : f32 to vector<16x128xf32>
    %106 = arith.select %104, %97, %105 : vector<16x128xi1>, vector<16x128xf32>
    %cst_24 = arith.constant dense<0xFF800000> : vector<128xf32>
    %107 = vector.multi_reduction <maximumf>, %106, %cst_24 [0] : vector<16x128xf32> to vector<128xf32>
    %108 = vector.shape_cast %107 : vector<128xf32> to vector<1x128xf32>
    %c1 = arith.constant 1 : index
    %c0_25 = arith.constant 0 : index
    %109 = vector.load %arg5[%c1, %c0_25] : memref<8x128xf32, #tpu.memory_space<vmem>>, vector<1x128xf32>
    tpu.vector_store %arg5[%c1, %c0_25], %108 {strides = array<i32>} : memref<8x128xf32, #tpu.memory_space<vmem>>, vector<1x128xf32>,
    %c40_i32_26 = arith.constant 40 : i32
    %110 = arith.minsi %20, %c40_i32_26 : i32
    %111 = arith.subi %20, %110 : i32
    %112 = vector.broadcast %111 : i32 to vector<16x1xi32>
    %113 = arith.subi %70, %112 : vector<16x1xi32>
    %114 = arith.addi %71, %110 : i32
    %115 = arith.index_cast %114 : i32 to index
    %c0_27 = arith.constant 0 : index
    %116 = vector.load %arg6[%115, %c0_27] : memref<112x128xf32, #tpu.memory_space<vmem>>, vector<16x128xf32>
    %c0_i32_28 = arith.constant 0 : i32
    %117 = vector.broadcast %c0_i32_28 : i32 to vector<16x1xi32>
    %118 = arith.cmpi sge, %113, %117 : vector<16x1xi32>
    %119 = vector.broadcast %49 : i32 to vector<16x1xi32>
    %120 = arith.cmpi slt, %113, %119 : vector<16x1xi32>
    %121 = arith.andi %118, %120 : vector<16x1xi1>
    %cst_29 = arith.constant -3.40282347E+38 : f32
    %122 = vector.shape_cast %121 : vector<16x1xi1> to vector<16x1xi1>
    %123 = vector.broadcast %122 : vector<16x1xi1> to vector<16x128xi1>
    %124 = vector.broadcast %cst_29 : f32 to vector<16x128xf32>
    %125 = arith.select %123, %116, %124 : vector<16x128xi1>, vector<16x128xf32>
    %cst_30 = arith.constant dense<0xFF800000> : vector<128xf32>
    %126 = vector.multi_reduction <maximumf>, %125, %cst_30 [0] : vector<16x128xf32> to vector<128xf32>
    %127 = vector.shape_cast %126 : vector<128xf32> to vector<1x128xf32>
    %c2 = arith.constant 2 : index
    %c0_31 = arith.constant 0 : index
    %128 = vector.load %arg5[%c2, %c0_31] : memref<8x128xf32, #tpu.memory_space<vmem>>, vector<1x128xf32>
    tpu.vector_store %arg5[%c2, %c0_31], %127 {strides = array<i32>} : memref<8x128xf32, #tpu.memory_space<vmem>>, vector<1x128xf32>,
    %c40_i32_32 = arith.constant 40 : i32
    %129 = arith.minsi %24, %c40_i32_32 : i32
    %130 = arith.subi %24, %129 : i32
    %131 = vector.broadcast %130 : i32 to vector<16x1xi32>
    %132 = arith.subi %70, %131 : vector<16x1xi32>
    %133 = arith.addi %71, %129 : i32
    %134 = arith.index_cast %133 : i32 to index
    %c0_33 = arith.constant 0 : index
    %135 = vector.load %arg6[%134, %c0_33] : memref<112x128xf32, #tpu.memory_space<vmem>>, vector<16x128xf32>
    %c0_i32_34 = arith.constant 0 : i32
    %136 = vector.broadcast %c0_i32_34 : i32 to vector<16x1xi32>
    %137 = arith.cmpi sge, %132, %136 : vector<16x1xi32>
    %138 = vector.broadcast %52 : i32 to vector<16x1xi32>
    %139 = arith.cmpi slt, %132, %138 : vector<16x1xi32>
    %140 = arith.andi %137, %139 : vector<16x1xi1>
    %cst_35 = arith.constant -3.40282347E+38 : f32
    %141 = vector.shape_cast %140 : vector<16x1xi1> to vector<16x1xi1>
    %142 = vector.broadcast %141 : vector<16x1xi1> to vector<16x128xi1>
    %143 = vector.broadcast %cst_35 : f32 to vector<16x128xf32>
    %144 = arith.select %142, %135, %143 : vector<16x128xi1>, vector<16x128xf32>
    %cst_36 = arith.constant dense<0xFF800000> : vector<128xf32>
    %145 = vector.multi_reduction <maximumf>, %144, %cst_36 [0] : vector<16x128xf32> to vector<128xf32>
    %146 = vector.shape_cast %145 : vector<128xf32> to vector<1x128xf32>
    %c3 = arith.constant 3 : index
    %c0_37 = arith.constant 0 : index
    %147 = vector.load %arg5[%c3, %c0_37] : memref<8x128xf32, #tpu.memory_space<vmem>>, vector<1x128xf32>
    tpu.vector_store %arg5[%c3, %c0_37], %146 {strides = array<i32>} : memref<8x128xf32, #tpu.memory_space<vmem>>, vector<1x128xf32>,
    %c40_i32_38 = arith.constant 40 : i32
    %148 = arith.minsi %28, %c40_i32_38 : i32
    %149 = arith.subi %28, %148 : i32
    %150 = vector.broadcast %149 : i32 to vector<16x1xi32>
    %151 = arith.subi %70, %150 : vector<16x1xi32>
    %152 = arith.addi %71, %148 : i32
    %153 = arith.index_cast %152 : i32 to index
    %c0_39 = arith.constant 0 : index
    %154 = vector.load %arg6[%153, %c0_39] : memref<112x128xf32, #tpu.memory_space<vmem>>, vector<16x128xf32>
    %c0_i32_40 = arith.constant 0 : i32
    %155 = vector.broadcast %c0_i32_40 : i32 to vector<16x1xi32>
    %156 = arith.cmpi sge, %151, %155 : vector<16x1xi32>
    %157 = vector.broadcast %55 : i32 to vector<16x1xi32>
    %158 = arith.cmpi slt, %151, %157 : vector<16x1xi32>
    %159 = arith.andi %156, %158 : vector<16x1xi1>
    %cst_41 = arith.constant -3.40282347E+38 : f32
    %160 = vector.shape_cast %159 : vector<16x1xi1> to vector<16x1xi1>
    %161 = vector.broadcast %160 : vector<16x1xi1> to vector<16x128xi1>
    %162 = vector.broadcast %cst_41 : f32 to vector<16x128xf32>
    %163 = arith.select %161, %154, %162 : vector<16x128xi1>, vector<16x128xf32>
    %cst_42 = arith.constant dense<0xFF800000> : vector<128xf32>
    %164 = vector.multi_reduction <maximumf>, %163, %cst_42 [0] : vector<16x128xf32> to vector<128xf32>
    %165 = vector.shape_cast %164 : vector<128xf32> to vector<1x128xf32>
    %c4 = arith.constant 4 : index
    %c0_43 = arith.constant 0 : index
    %166 = vector.load %arg5[%c4, %c0_43] : memref<8x128xf32, #tpu.memory_space<vmem>>, vector<1x128xf32>
    tpu.vector_store %arg5[%c4, %c0_43], %165 {strides = array<i32>} : memref<8x128xf32, #tpu.memory_space<vmem>>, vector<1x128xf32>,
    %c40_i32_44 = arith.constant 40 : i32
    %167 = arith.minsi %32, %c40_i32_44 : i32
    %168 = arith.subi %32, %167 : i32
    %169 = vector.broadcast %168 : i32 to vector<16x1xi32>
    %170 = arith.subi %70, %169 : vector<16x1xi32>
    %171 = arith.addi %71, %167 : i32
    %172 = arith.index_cast %171 : i32 to index
    %c0_45 = arith.constant 0 : index
    %173 = vector.load %arg6[%172, %c0_45] : memref<112x128xf32, #tpu.memory_space<vmem>>, vector<16x128xf32>
    %c0_i32_46 = arith.constant 0 : i32
    %174 = vector.broadcast %c0_i32_46 : i32 to vector<16x1xi32>
    %175 = arith.cmpi sge, %170, %174 : vector<16x1xi32>
    %176 = vector.broadcast %58 : i32 to vector<16x1xi32>
    %177 = arith.cmpi slt, %170, %176 : vector<16x1xi32>
    %178 = arith.andi %175, %177 : vector<16x1xi1>
    %cst_47 = arith.constant -3.40282347E+38 : f32
    %179 = vector.shape_cast %178 : vector<16x1xi1> to vector<16x1xi1>
    %180 = vector.broadcast %179 : vector<16x1xi1> to vector<16x128xi1>
    %181 = vector.broadcast %cst_47 : f32 to vector<16x128xf32>
    %182 = arith.select %180, %173, %181 : vector<16x128xi1>, vector<16x128xf32>
    %cst_48 = arith.constant dense<0xFF800000> : vector<128xf32>
    %183 = vector.multi_reduction <maximumf>, %182, %cst_48 [0] : vector<16x128xf32> to vector<128xf32>
    %184 = vector.shape_cast %183 : vector<128xf32> to vector<1x128xf32>
    %c5 = arith.constant 5 : index
    %c0_49 = arith.constant 0 : index
    %185 = vector.load %arg5[%c5, %c0_49] : memref<8x128xf32, #tpu.memory_space<vmem>>, vector<1x128xf32>
    tpu.vector_store %arg5[%c5, %c0_49], %184 {strides = array<i32>} : memref<8x128xf32, #tpu.memory_space<vmem>>, vector<1x128xf32>,
    %c40_i32_50 = arith.constant 40 : i32
    %186 = arith.minsi %36, %c40_i32_50 : i32
    %187 = arith.subi %36, %186 : i32
    %188 = vector.broadcast %187 : i32 to vector<16x1xi32>
    %189 = arith.subi %70, %188 : vector<16x1xi32>
    %190 = arith.addi %71, %186 : i32
    %191 = arith.index_cast %190 : i32 to index
    %c0_51 = arith.constant 0 : index
    %192 = vector.load %arg6[%191, %c0_51] : memref<112x128xf32, #tpu.memory_space<vmem>>, vector<16x128xf32>
    %c0_i32_52 = arith.constant 0 : i32
    %193 = vector.broadcast %c0_i32_52 : i32 to vector<16x1xi32>
    %194 = arith.cmpi sge, %189, %193 : vector<16x1xi32>
    %195 = vector.broadcast %61 : i32 to vector<16x1xi32>
    %196 = arith.cmpi slt, %189, %195 : vector<16x1xi32>
    %197 = arith.andi %194, %196 : vector<16x1xi1>
    %cst_53 = arith.constant -3.40282347E+38 : f32
    %198 = vector.shape_cast %197 : vector<16x1xi1> to vector<16x1xi1>
    %199 = vector.broadcast %198 : vector<16x1xi1> to vector<16x128xi1>
    %200 = vector.broadcast %cst_53 : f32 to vector<16x128xf32>
    %201 = arith.select %199, %192, %200 : vector<16x128xi1>, vector<16x128xf32>
    %cst_54 = arith.constant dense<0xFF800000> : vector<128xf32>
    %202 = vector.multi_reduction <maximumf>, %201, %cst_54 [0] : vector<16x128xf32> to vector<128xf32>
    %203 = vector.shape_cast %202 : vector<128xf32> to vector<1x128xf32>
    %c6 = arith.constant 6 : index
    %c0_55 = arith.constant 0 : index
    %204 = vector.load %arg5[%c6, %c0_55] : memref<8x128xf32, #tpu.memory_space<vmem>>, vector<1x128xf32>
    tpu.vector_store %arg5[%c6, %c0_55], %203 {strides = array<i32>} : memref<8x128xf32, #tpu.memory_space<vmem>>, vector<1x128xf32>,
    %c40_i32_56 = arith.constant 40 : i32
    %205 = arith.minsi %40, %c40_i32_56 : i32
    %206 = arith.subi %40, %205 : i32
    %207 = vector.broadcast %206 : i32 to vector<16x1xi32>
    %208 = arith.subi %70, %207 : vector<16x1xi32>
    %209 = arith.addi %71, %205 : i32
    %210 = arith.index_cast %209 : i32 to index
    %c0_57 = arith.constant 0 : index
    %211 = vector.load %arg6[%210, %c0_57] : memref<112x128xf32, #tpu.memory_space<vmem>>, vector<16x128xf32>
    %c0_i32_58 = arith.constant 0 : i32
    %212 = vector.broadcast %c0_i32_58 : i32 to vector<16x1xi32>
    %213 = arith.cmpi sge, %208, %212 : vector<16x1xi32>
    %214 = vector.broadcast %64 : i32 to vector<16x1xi32>
    %215 = arith.cmpi slt, %208, %214 : vector<16x1xi32>
    %216 = arith.andi %213, %215 : vector<16x1xi1>
    %cst_59 = arith.constant -3.40282347E+38 : f32
    %217 = vector.shape_cast %216 : vector<16x1xi1> to vector<16x1xi1>
    %218 = vector.broadcast %217 : vector<16x1xi1> to vector<16x128xi1>
    %219 = vector.broadcast %cst_59 : f32 to vector<16x128xf32>
    %220 = arith.select %218, %211, %219 : vector<16x128xi1>, vector<16x128xf32>
    %cst_60 = arith.constant dense<0xFF800000> : vector<128xf32>
    %221 = vector.multi_reduction <maximumf>, %220, %cst_60 [0] : vector<16x128xf32> to vector<128xf32>
    %222 = vector.shape_cast %221 : vector<128xf32> to vector<1x128xf32>
    %c7 = arith.constant 7 : index
    %c0_61 = arith.constant 0 : index
    %223 = vector.load %arg5[%c7, %c0_61] : memref<8x128xf32, #tpu.memory_space<vmem>>, vector<1x128xf32>
    tpu.vector_store %arg5[%c7, %c0_61], %222 {strides = array<i32>} : memref<8x128xf32, #tpu.memory_space<vmem>>, vector<1x128xf32>,
    return
  }
  func.func @transform_1(%arg0: i32, %arg1: i32, %arg2: memref<16xi32, #tpu.memory_space<smem>>, %arg3: memref<16xi32, #tpu.memory_space<smem>>) -> (i32, i32) {
    %c1_i32 = arith.constant 1 : i32
    %0 = arith.muli %arg0, %c1_i32 : i32
    %1 = arith.addi %0, %arg1 : i32
    %c0_i32 = arith.constant 0 : i32
    %c0_i32_0 = arith.constant 0 : i32
    return %1, %c0_i32 : i32, i32
  }
}

</mosaic_0001>

<bundles_post_ra>
// kernel: tpu_custom_call.1
= control target key start
LH: loop header
LB: loop body
LE: loop exit
PB: predicated region body
PF: predicated region fallthrough
CT: control target
= control target key end

     0   :  { %s646_s12 = smov [#allocation5]   ;;  %s980_s0 = inlined_call_operand.hbm [shape: s32[16], index: 0, kind: input, shape index: {}]   ;;  %s981_s2 = inlined_call_operand.hbm [shape: f32[107,128], index: 2, kind: input, shape index: {}]   ;;  %s982_s3 = inlined_call_operand.hbm [shape: f32[16,128], index: 3, kind: output, shape index: {}]   ;;  %s983_s1 = inlined_call_operand.vmem [shape: s32[16], index: 1, kind: input, shape index: {}]  }
   0x1   :  { %993 = sst [smem:[#allocation21_spill]] %s981_s2  ;;  %s10_s17 = sshll.u32 %s983_s1, 4  ;;  %s11_s17 = int_to_ptr.vmem [resolvable:$true] %s10_s17 }
   0x2   :  { %9 = dma.hbm_to_smem %s980_s0, 16, %s646_s12, [#allocation4] }
   0x3   :  { %s546_s18 = scalar_lea.vmem %s11_s17, 16  ;;  %p551_p1 = scmp.lt.s32.totalorder %s11_s17, %s11_s17 }
   0x4   :  { %p547_p0 = scmp.ne.s32.totalorder %s11_s17, %s546_s18  ;;  %p552_p2 = scmp.lt.s32.totalorder %s546_s18, %s546_s18 }
   0x6   :  { %p553_p3 = por %p552_p2, %p551_p1 }
   0x8   :  { %p554_p4 = pnand %p553_p3, %p547_p0 }
   0xa   :  { %557 = shalt.err (!%p554_p4)  }
   0xb   :  { %s647_s19 = smov [#allocation6]  }
   0xc   :  { %13 = dma.vmem_to_smem %s11_s17, 16, %s647_s19, [#allocation4] }
   0xd   :  { %622 = dma.done.wait [#allocation4], 32 }
   0xe   :  { %623 = vsyncadd [#allocation4], 4294967264 }
   0xf   :  { %15 = sfence }
  0x10   :  { %16 = vsyncpa [#allocation8], 0 }
  0x11   :  { %18 = vsyncpa [#allocation8 + $0x1], 0  ;;  %s676_s0 = smov 0   ;;  %s678_s20 = smov 0  }
  0x12   :  { %s680_s1 = smov 0   ;;  %s682_s21 = smov 0  }
  0x13 LB: > { %994 = sst [smem:[#allocation16_spill]] %s632_s0  ;;  %s33_s22 = sadd.s32 1, %s640_s1  ;;  %s644_s21 = sphi %s682_s21, %s24_s21   ;;  %s640_s1 = sphi %s680_s1, %s1022_s1   ;;  %s636_s20 = sphi %s678_s20, %s1024_s20   ;;  %s632_s0 = sphi %s676_s0, %s1023_s0  }
  0x14   : > { %995 = sst [smem:[#allocation17_spill]] %s644_s21  ;;  %s483_s23 = sadd.s32 4294967295, %s644_s21  }
  0x15   : > { %p35_p5 = scmp.ge.s32.totalorder %s33_s22, 2  ;;  %p51_p6 = scmp.ne.s32.totalorder %s636_s20, %s632_s0 }
  0x16   : > { %s42_s24 = sadd.s32 1, %s636_s20  ;;  %p52_p7 = scmp.eq.s32.totalorder %s483_s23, 1 }
  0x17   : > { %s1026_s22 = smov (%p35_p5, %s33_s22), 0  ;;  %p46_p8 = scmp.eq.s32.totalorder %s644_s21, 1 }
  0x18   : > { %996 = sst [smem:[#allocation18_spill]] %s1026_s22  ;;  %s39_s25 = ssub.s32 %s640_s1, %s1026_s22 }
  0x19   : > { %p40_p9 = scmp.eq.s32.totalorder %s39_s25, 0  ;;  %p484_p10 = scmp.ne.s32.totalorder %s39_s25, 0 }
  0x1a   : > { %p706_p11 = por %p52_p7, %p51_p6  ;;  %p485_p13 = scmp.ge.s32.totalorder %s644_s21, 2 }
  0x1b   : > { %s711_s27 = scalar_select %p40_p9, %s636_s20, %s42_s24  }
  0x1c   : > { %s997_s26 = scalar_select %p706_p11, 1, 0 }
  0x1d   : > { %999 = sst [smem:[#allocation20_spill]] %s711_s27  ;;  %p713_p12 = por %p484_p10, %p46_p8 }
  0x1e   : > { %998 = sst [smem:[#allocation19_spill]] %s997_s26  ;;  %61 = sbr.rel (%p485_p13) target bundleno = 129 (0x81), region = 12 }
  0x1f   : > { %s984_s29 = sand.u32 (!%p485_p13), 1, %s636_s20   ;;  %s720_s30 = sshll.u32 (!%p485_p13), %s640_s1, 3 }
  0x20   : > { %s724_s4 = sshll.u32 (!%p485_p13), %s984_s29, 3  ;;  %s82_s5 = sld [smem:[#allocation5 + %s720_s30]] (!%p485_p13) }
  0x21   : > { %s648_s6 = smov (!%p485_p13), [#allocation2]   ;;  %s728_s8 = sld [smem:[#allocation5 + %s720_s30]] (!%p485_p13) }
  0x22   : > { %s95_s7 = sshll.u32 (!%p485_p13), %s648_s6, 4  ;;  %s985_s9 = sadd.s32 (!%p485_p13), 1, %s720_s30  ;;  %s96_s7 = int_to_ptr.vmem [resolvable:$true] %s95_s7 }
  0x23   : > { %s102_s10 = sld [smem:[#allocation5 + %s985_s9]]  ;;  %s104_s11 = sadd.s32 2, %s720_s30 }
  0x24   : > { %s105_s12 = sld [smem:[#allocation5 + %s104_s11]]  ;;  %s986_s13 = sadd.s32 3, %s720_s30 }
  0x25   : > { %s108_s15 = sld [smem:[#allocation5 + %s986_s13]]  ;;  %s987_s19 = sadd.s32 4, %s720_s30 }
  0x26   : > { %s488_s14 = sshll.u32 %s82_s5, 4  ;;  %s1001_s2 = sld [smem:[#allocation21_spill]] }
  0x2c   : > { %s85_s18 = scalar_lea.hbm %s1001_s2, %s488_s14  ;;  %s560_s6 = scalar_lea.hbm %s1001_s2, 1792 }
  0x2d   : > { %s558_s23 = scalar_lea.hbm %s85_s18, 896  ;;  %p561_p1 = scmp.lt.s32.totalorder %s85_s18, %s1001_s2 }
  0x2e   : > { %p559_p0 = scmp.ne.s32.totalorder %s85_s18, %s558_s23  ;;  %p562_p2 = scmp.lt.s32.totalorder %s560_s6, %s558_s23 }
  0x30   : > { %p563_p3 = por %p562_p2, %p561_p1 }
  0x32   : > { %p564_p4 = pnand %p563_p3, %p559_p0 }
  0x34   : > { %567 = shalt.err (!%p564_p4)  }
  0x35   : > { %s568_s5 = scalar_lea.vmem %s96_s7, 896  ;;  %s572_s13 = scalar_lea.vmem %s96_s7, 1792 }
  0x36   : > { %p569_p5 = scmp.ne.s32.totalorder %s96_s7, %s568_s5  ;;  %p573_p6 = scmp.lt.s32.totalorder %s96_s7, %s96_s7 }
  0x37   : > { %p574_p7 = scmp.lt.s32.totalorder %s572_s13, %s568_s5 }
  0x39   : > { %p575_p8 = por %p574_p7, %p573_p6 }
  0x3b   : > { %p576_p9 = pnand %p575_p8, %p569_p5 }
  0x3d   : > { %579 = shalt.err (!%p576_p9)  }
  0x3e   : > { %98 = dma.hbm_to_vmem [thread:$0]  %s85_s18, 896, %s96_s7, [#allocation3] }
  0x3f   : > { %s111_s29 = sld [smem:[#allocation5 + %s987_s19]]  ;;  %s113_s9 = sadd.s32 5, %s720_s30 }
  0x40   : > { %s753_s13 = ssub.s32 %s102_s10, %s728_s8  ;;  %s114_s7 = sld [smem:[#allocation5 + %s113_s9]] }
  0x41   : > { %s756_s14 = ssub.s32 %s105_s12, %s728_s8  ;;  %s116_s16 = sadd.s32 6, %s720_s30 }
  0x42   : > { %s760_s17 = ssub.s32 %s108_s15, %s728_s8  ;;  %s117_s18 = sld [smem:[#allocation5 + %s116_s16]] }
  0x43   : > { %s119_s23 = sadd.s32 7, %s720_s30  ;;  %s764_s24 = sld [smem:[#allocation6 + %s720_s30]] }
  0x44   : > { %s120_s25 = sld [smem:[#allocation5 + %s119_s23]]  ;;  %s1002_s5 = sadd.s32 1, %s720_s30 }
  0x45   : > { %s767_s6 = ssub.s32 %s111_s29, %s728_s8  ;;  %s771_s19 = sld [smem:[#allocation6 + %s1002_s5]] }
  0x46   : > { %s774_s10 = ssub.s32 %s114_s7, %s728_s8  ;;  %s778_s2 = sld [smem:[#allocation6 + %s104_s11]] }
  0x47   : > { %s1003_s12 = sadd.s32 3, %s720_s30  ;;  %s1004_s27 = sadd.s32 4, %s720_s30 }
  0x48   : > { %s782_s22 = sld [smem:[#allocation6 + %s1003_s12]]  ;;  %s785_s15 = ssub.s32 %s117_s18, %s728_s8 }
  0x49   : > { %s789_s26 = sld [smem:[#allocation6 + %s1004_s27]]  ;;  %s801_s7 = scalar_lea.vmem [#allocation7], %s724_s4 }
  0x4a   : > { %s791_s0 = sld [smem:[#allocation6 + %s113_s9]]  ;;  %s794_s29 = ssub.s32 %s120_s25, %s728_s8 }
  0x4b   : > { %s796_s21 = sld [smem:[#allocation6 + %s116_s16]] }
  0x4c   : > { %s798_s5 = sld [smem:[#allocation6 + %s119_s23]] }
  0x4d   : > { %624 = dma.done.wait [#allocation3], 896 }
  0x4e   : > { %625 = vsyncadd [#allocation3], 4294966400  ;;  %v135_v0 = vlaneseq  ;;  %p162_p10 = scmp.lt.s32.totalorder %s753_s13, 40  ;;  %p193_p13 = scmp.lt.s32.totalorder %s756_s14, 40  ;;  %v143_v2 = vstv %s764_s24  ;;  %v174_v4 = vstv %s771_s19  ;;  %v205_v5 = vstv %s778_s2  ;;  %v139_v15 = vld [vmem:[#allocation2] sm:$0xff]  ;;  %v140_v16 = vld [vmem:[#allocation2 + $0x8] sm:$0xff] }
  0x4f   : > { %p224_p0 = scmp.lt.s32.totalorder %s760_s17, 40  ;;  %p255_p1 = scmp.lt.s32.totalorder %s767_s6, 40  ;;  %v236_v6 = vstv %s782_s22  ;;  %v267_v9 = vstv %s789_s26 }
  0x50   : > { %v807_v1 = vshrl.u32 %v135_v0, 7  ;;  %s163_s27 = scalar_select %p162_p10, %s753_s13, 40  ;;  %v298_v10 = vstv %s791_s0 }
  0x51   : > { %s812_s30 = scalar_select %p193_p13, %s756_s14, 40  ;;  %v329_v20 = vstv %s796_s21 }
  0x52   : > { %v815_v3 = vadd.s32 8, %v807_v1  ;;  %s164_s4 = ssub.s32 %s753_s13, %s163_s27  ;;  %vm822_vm0 = vcmp.lt.s32.totalorder %v807_v1, %v143_v2  ;;  %s169_s11 = scalar_lea.vmem [#allocation2], %s163_s27  ;;  %v360_v21 = vstv %s798_s5 }
  0x53   : > { %v165_v8 = vstv %s164_s4  ;;  %s195_s8 = ssub.s32 %s756_s14, %s812_s30  ;;  %v170_v17 = vld [vmem:[%s169_s11] sm:$0xff]  ;;  %v152_v22 = vsel %vm822_vm0, %v139_v15, -3.4028235e+38  ;;  %v171_v24 = vld [vmem:[%s169_s11 + $0x8] sm:$0xff]  ;;  %s200_s13 = scalar_lea.vmem [#allocation2], %s812_s30 }
  0x54   : > { %vm831_vm1 = vcmp.lt.s32.totalorder %v815_v3, %v143_v2  ;;  %v166_v12 = vsub.s32 %v807_v1, %v165_v8  ;;  %v167_v13 = vsub.s32 %v815_v3, %v165_v8  ;;  %v196_v14 = vstv %s195_s8  ;;  %s840_s2 = scalar_select %p224_p0, %s760_s17, 40  ;;  %v201_v27 = vld [vmem:[%s200_s13] sm:$0xff]  ;;  %v202_v29 = vld [vmem:[%s200_s13 + $0x8] sm:$0xff] }
  0x55   : > { %v197_v18 = vsub.s32 %v807_v1, %v196_v14  ;;  %v198_v19 = vsub.s32 %v815_v3, %v196_v14  ;;  %s847_s19 = scalar_select %p255_p1, %s767_s6, 40  ;;  %v153_v23 = vsel %vm831_vm1, %v140_v16, -3.4028235e+38 }
  0x56   : > { %vm172_vm2 = vcmp.ge.s32.totalorder %v166_v12, 0  ;;  %vm175_vm3 = vcmp.lt.s32.totalorder %v166_v12, %v174_v4  ;;  %s226_s9 = ssub.s32 %s760_s17, %s840_s2  ;;  %v154_v25 = vmax.f32 %v152_v22, %v153_v23  ;;  %vm173_vm4 = vcmp.ge.s32.totalorder %v167_v13, 0  ;;  %p286_p2 = scmp.lt.s32.totalorder %s774_s10, 40 }
  0x57   : > { %vm176_vm5 = vcmp.lt.s32.totalorder %v167_v13, %v174_v4  ;;  %vm857_vm6 = vmand %vm172_vm2, %vm175_vm3  ;;  %vm203_vm7 = vcmp.ge.s32.totalorder %v197_v18, 0  ;;  %s257_s14 = ssub.s32 %s767_s6, %s847_s19  ;;  %vm204_vm9 = vcmp.ge.s32.totalorder %v198_v19, 0  ;;  %vm206_vm10 = vcmp.lt.s32.totalorder %v197_v18, %v205_v5  ;;  %p317_p3 = scmp.lt.s32.totalorder %s785_s15, 40 }
  0x58   : > { %vm178_vm8 = vmand %vm173_vm4, %vm176_vm5  ;;  %v183_v28 = vsel %vm857_vm6, %v170_v17, -3.4028235e+38  ;;  %vm207_vm11 = vcmp.lt.s32.totalorder %v198_v19, %v205_v5  ;;  %v155_v30 = vrot.slane %v154_v25, 4  ;;  %v227_v33 = vstv %s226_s9  ;;  %p348_p4 = scmp.lt.s32.totalorder %s794_s29, 40  ;;  %s231_s17 = scalar_lea.vmem [#allocation2], %s840_s2 }
  0x59   : > { %v184_v31 = vsel %vm178_vm8, %v171_v24, -3.4028235e+38  ;;  %vm866_vm12 = vmand %vm203_vm7, %vm206_vm10  ;;  %v258_v34 = vstv %s257_s14  ;;  %v228_v37 = vsub.s32 %v807_v1, %v227_v33  ;;  %v229_v38 = vsub.s32 %v815_v3, %v227_v33  ;;  %s880_s16 = scalar_select %p286_p2, %s774_s10, 40  ;;  %v232_v45 = vld [vmem:[%s231_s17] sm:$0xff]  ;;  %v233_v47 = vld [vmem:[%s231_s17 + $0x8] sm:$0xff] }
  0x5a   : > { %v185_v35 = vmax.f32 %v183_v28, %v184_v31  ;;  %vm209_vm13 = vmand %vm204_vm9, %vm207_vm11  ;;  %v214_v36 = vsel %vm866_vm12, %v201_v27, -3.4028235e+38  ;;  %v156_v39 = vmax.f32 %v154_v25, %v155_v30  ;;  %v259_v41 = vsub.s32 %v807_v1, %v258_v34  ;;  %s262_s23 = scalar_lea.vmem [#allocation2], %s847_s19  ;;  %s491_s21 = sshll.u32 %s640_s1, 7 }
  0x5b   : > { %v215_v40 = vsel %vm209_vm13, %v202_v29, -3.4028235e+38  ;;  %v260_v42 = vsub.s32 %v815_v3, %v258_v34  ;;  %vm234_vm14 = vcmp.ge.s32.totalorder %v228_v37, 0  ;;  %vm235_vm15 = vcmp.ge.s32.totalorder %v229_v38, 0  ;;  %s288_s18 = ssub.s32 %s774_s10, %s880_s16  ;;  %v263_v51 = vld [vmem:[%s262_s23] sm:$0xff]  ;;  %v264_v54 = vld [vmem:[%s262_s23 + $0x8] sm:$0xff]  ;;  %s392_s5 = scalar_lea.hbm %s982_s3, %s491_s21 }
  0x5c   : > { %v186_v43 = vrot.slane %v185_v35, 4  ;;  %v216_v44 = vmax.f32 %v214_v36, %v215_v40  ;;  %v157_v46 = vrot.slane %v156_v39, 2  ;;  %vm237_vm0 = vcmp.lt.s32.totalorder %v228_v37, %v236_v6  ;;  %s899_s24 = scalar_select %p317_p3, %s785_s15, 40 }
  0x5d   : > { %vm238_vm1 = vcmp.lt.s32.totalorder %v229_v38, %v236_v6  ;;  %vm265_vm2 = vcmp.ge.s32.totalorder %v259_v41, 0  ;;  %vm889_vm3 = vmand %vm234_vm14, %vm237_vm0  ;;  %vm266_vm4 = vcmp.ge.s32.totalorder %v260_v42, 0  ;;  %vm268_vm5 = vcmp.lt.s32.totalorder %v259_v41, %v267_v9  ;;  %s909_s22 = scalar_select %p348_p4, %s794_s29, 40 }
  0x5e   : > { %v187_v48 = vmax.f32 %v185_v35, %v186_v43  ;;  %v217_v49 = vrot.slane %v216_v44, 4  ;;  %v158_v52 = vmax.f32 %v156_v39, %v157_v46  ;;  %vm240_vm6 = vmand %vm235_vm15, %vm238_vm1  ;;  %v245_v53 = vsel %vm889_vm3, %v232_v45, -3.4028235e+38  ;;  %s319_s26 = ssub.s32 %s785_s15, %s899_s24  ;;  %s293_s6 = scalar_lea.vmem [#allocation2], %s880_s16 }
  0x5f   : > { %vm269_vm7 = vcmp.lt.s32.totalorder %v260_v42, %v267_v9  ;;  %v289_v55 = vstv %s288_s18  ;;  %v246_v58 = vsel %vm240_vm6, %v233_v47, -3.4028235e+38  ;;  %vm270_vm8 = vmand %vm265_vm2, %vm268_vm5  ;;  %s350_s25 = ssub.s32 %s794_s29, %s909_s22  ;;  %v294_v8 = vld [vmem:[%s293_s6] sm:$0xff]  ;;  %v295_v12 = vld [vmem:[%s293_s6 + $0x8] sm:$0xff]  ;;  %v320_v16 = vstv %s319_s26  ;;  %s324_s0 = scalar_lea.vmem [#allocation2], %s899_s24 }
  0x60   : > { %v188_v56 = vrot.slane %v187_v48, 2  ;;  %v218_v57 = vmax.f32 %v216_v44, %v217_v49  ;;  %v290_v59 = vsub.s32 %v807_v1, %v289_v55  ;;  %v159_v60 = vrot.slane %v158_v52, 1  ;;  %vm271_vm9 = vmand %vm266_vm4, %vm269_vm7  ;;  %v325_v27 = vld [vmem:[%s324_s0] sm:$0xff]  ;;  %v326_v30 = vld [vmem:[%s324_s0 + $0x8] sm:$0xff]  ;;  %s355_s10 = scalar_lea.vmem [#allocation2], %s909_s22  ;;  %s394_s12 = sshll.u32 %s801_s7, 4  ;;  %s395_s12 = int_to_ptr.vmem [resolvable:$true] %s394_s12 }
  0x61   : > { %v247_v61 = vmax.f32 %v245_v53, %v246_v58  ;;  %v276_v62 = vsel %vm270_vm8, %v263_v51, -3.4028235e+38  ;;  %v291_v63 = vsub.s32 %v815_v3, %v289_v55  ;;  %v277_v4 = vsel %vm271_vm9, %v264_v54, -3.4028235e+38  ;;  %v356_v42 = vld [vmem:[%s355_s10] sm:$0xff]  ;;  %v357_v44 = vld [vmem:[%s355_s10 + $0x8] sm:$0xff] }
  0x62   : > { %v189_v0 = vmax.f32 %v187_v48, %v188_v56  ;;  %v219_v2 = vrot.slane %v218_v57, 2  ;;  %vm296_vm10 = vcmp.ge.s32.totalorder %v290_v59, 0  ;;  %v160_v5 = vmax.f32 %v158_v52, %v159_v60  ;;  %s1017_s27 = sand.u32 1, %s636_s20   ;;  %s580_s4 = scalar_lea.vmem %s395_s12, 128 }
  0x63   : > { %v248_v6 = vrot.slane %v247_v61, 4  ;;  %v278_v7 = vmax.f32 %v276_v62, %v277_v4  ;;  %vm297_vm11 = vcmp.ge.s32.totalorder %v291_v63, 0  ;;  %vm299_vm12 = vcmp.lt.s32.totalorder %v290_v59, %v298_v10  ;;  %s380_s30 = scalar_lea.sflag [#allocation8], %s1017_s27  ;;  %p581_p5 = scmp.ne.s32.totalorder %s395_s12, %s580_s4 }
  0x64   : > { %v190_v9 = vrot.slane %v189_v0, 1  ;;  %v220_v11 = vmax.f32 %v218_v57, %v219_v2  ;;  %vm300_vm13 = vcmp.lt.s32.totalorder %v291_v63, %v298_v10  ;;  %161 = vst [vmem:[%s801_s7] sm:$0x1] %v160_v5  ;;  %vm926_vm14 = vmand %vm296_vm10, %vm299_vm12  ;;  %v351_v17 = vstv %s350_s25  ;;  %s649_s8 = smov [#allocation7]  }
  0x65   : > { %v249_v13 = vmax.f32 %v247_v61, %v248_v6  ;;  %v279_v14 = vrot.slane %v278_v7, 4  ;;  %vm302_vm15 = vmand %vm297_vm11, %vm300_vm13  ;;  %v307_v22 = vsel %vm926_vm14, %v294_v8, -3.4028235e+38  ;;  %v321_v10 = vsub.s32 %v807_v1, %v320_v16  ;;  %p582_p6 = pnand %p581_p5, %p713_p12  ;;  %s584_s2 = sshll.u32 %s649_s8, 4  ;;  %s585_s2 = int_to_ptr.vmem [resolvable:$false] %s584_s2 }
  0x66   : > { %v191_v18 = vmax.f32 %v189_v0, %v190_v9  ;;  %v221_v19 = vrot.slane %v220_v11, 1  ;;  %v308_v25 = vsel %vm302_vm15, %v295_v12, -3.4028235e+38  ;;  %v322_v26 = vsub.s32 %v815_v3, %v320_v16  ;;  %s586_s1 = scalar_lea.vmem %s585_s2, 256  ;;  %p587_p8 = scmp.lt.s32.totalorder %s395_s12, %s585_s2 }
  0x67   : > { %v250_v23 = vrot.slane %v249_v13, 2  ;;  %v280_v24 = vmax.f32 %v278_v7, %v279_v14  ;;  %v309_v29 = vmax.f32 %v307_v22, %v308_v25  ;;  %vm327_vm0 = vcmp.ge.s32.totalorder %v321_v10, 0  ;;  %p583_p7 = pneg %p582_p6  ;;  %p588_p9 = scmp.lt.s32.totalorder %s586_s1, %s580_s4 }
  0x68   : > { %192 = vst [vmem:[%s801_s7 + $0x1] sm:$0x1] %v191_v18  ;;  %v222_v28 = vmax.f32 %v220_v11, %v221_v19  ;;  %vm330_vm1 = vcmp.lt.s32.totalorder %v321_v10, %v329_v20  ;;  %vm328_vm2 = vcmp.ge.s32.totalorder %v322_v26, 0  ;;  %vm331_vm3 = vcmp.lt.s32.totalorder %v322_v26, %v329_v20 }
  0x69   : > { %v251_v31 = vmax.f32 %v249_v13, %v250_v23  ;;  %v281_v32 = vrot.slane %v280_v24, 2  ;;  %vm332_vm4 = vmand %vm327_vm0, %vm330_vm1  ;;  %v310_v33 = vrot.slane %v309_v29, 4  ;;  %v352_v35 = vsub.s32 %v807_v1, %v351_v17  ;;  %p589_p10 = por %p588_p9, %p587_p8 }
  0x6a   : > { %223 = vst [vmem:[%s801_s7 + $0x2] sm:$0x1] %v222_v28  ;;  %vm333_vm5 = vmand %vm328_vm2, %vm331_vm3  ;;  %v338_v34 = vsel %vm332_vm4, %v325_v27, -3.4028235e+38  ;;  %v353_v36 = vsub.s32 %v815_v3, %v351_v17 }
  0x6b   : > { %v252_v37 = vrot.slane %v251_v31, 1  ;;  %v282_v38 = vmax.f32 %v280_v24, %v281_v32  ;;  %v339_v39 = vsel %vm333_vm5, %v326_v30, -3.4028235e+38  ;;  %v311_v40 = vmax.f32 %v309_v29, %v310_v33  ;;  %p590_p13 = pnand %p589_p10, %p583_p7 }
  0x6c   : > { %v340_v41 = vmax.f32 %v338_v34, %v339_v39  ;;  %vm358_vm6 = vcmp.ge.s32.totalorder %v352_v35, 0  ;;  %vm359_vm7 = vcmp.ge.s32.totalorder %v353_v36, 0  ;;  %vm361_vm8 = vcmp.lt.s32.totalorder %v352_v35, %v360_v21 }
  0x6d   : > { %v253_v20 = vmax.f32 %v251_v31, %v252_v37  ;;  %v283_v43 = vrot.slane %v282_v38, 1  ;;  %vm362_vm9 = vcmp.lt.s32.totalorder %v353_v36, %v360_v21  ;;  %v312_v1 = vrot.slane %v311_v40, 2  ;;  %vm363_vm10 = vmand %vm358_vm6, %vm361_vm8 }
  0x6e   : > { %v341_v3 = vrot.slane %v340_v41, 4  ;;  %vm364_vm11 = vmand %vm359_vm7, %vm362_vm9  ;;  %v369_v46 = vsel %vm363_vm10, %v356_v42, -3.4028235e+38 }
  0x6f   : > { %254 = vst [vmem:[%s801_s7 + $0x3] sm:$0x1] %v253_v20  ;;  %v284_v45 = vmax.f32 %v282_v38, %v283_v43  ;;  %v313_v47 = vmax.f32 %v311_v40, %v312_v1  ;;  %v370_v49 = vsel %vm364_vm11, %v357_v44, -3.4028235e+38 }
  0x70   : > { %v342_v48 = vmax.f32 %v340_v41, %v341_v3  ;;  %v371_v50 = vmax.f32 %v369_v46, %v370_v49 }
  0x71   : > { %285 = vst [vmem:[%s801_s7 + $0x4] sm:$0x1] %v284_v45  ;;  %v314_v51 = vrot.slane %v313_v47, 1 }
  0x72   : > { %v343_v52 = vrot.slane %v342_v48, 2  ;;  %v372_v53 = vrot.slane %v371_v50, 4 }
  0x73   : > { %v315_v21 = vmax.f32 %v313_v47, %v314_v51 }
  0x74   : > { %v344_v54 = vmax.f32 %v342_v48, %v343_v52  ;;  %v373_v55 = vmax.f32 %v371_v50, %v372_v53 }
  0x75   : > { %316 = vst [vmem:[%s801_s7 + $0x5] sm:$0x1] %v315_v21 }
  0x76   : > { %v345_v56 = vrot.slane %v344_v54, 1  ;;  %v374_v57 = vrot.slane %v373_v55, 2 }
  0x78   : > { %v346_v58 = vmax.f32 %v344_v54, %v345_v56  ;;  %v375_v59 = vmax.f32 %v373_v55, %v374_v57 }
  0x7a   : > { %347 = vst [vmem:[%s801_s7 + $0x6] sm:$0x1] %v346_v58  ;;  %v376_v60 = vrot.slane %v375_v59, 1 }
  0x7c   : > { %v377_v61 = vmax.f32 %v375_v59, %v376_v60 }
  0x7e   : > { %378 = vst [vmem:[%s801_s7 + $0x7] sm:$0x1] %v377_v61 }
  0x7f   : > { %593 = shalt.err (!%p590_p13)
}
  0x80   : > { %496 = dma.vmem_to_hbm [thread:$0]  (%p713_p12), %s395_s12, 128, %s392_s5, %s380_s30  }
  0x81 PF: > { %s1018_s7 = sld [smem:[#allocation17_spill]] }
  0x82   : > { %s1019_s11 = sld [smem:[#allocation16_spill]] }
  0x87   : > { %p502_p0 = scmp.ge.s32.totalorder %s1018_s7, 1 }
  0x88   : > { %s406_s9 = sand.u32 1, %s1019_s11  }
  0x89   : > { %p499_p1 = pnand %p502_p0, %p706_p11  ;;  %s407_s13 = scalar_lea.sflag [#allocation8], %s406_s9 }
  0x8b   : > { %p500_p2 = pneg %p499_p1 }
  0x8d   : > { %627 = dma.done.wait (%p500_p2), %s407_s13, 128  }
  0x8e   : > { %629 = vsyncadd (%p500_p2), %s407_s13, 4294967168  ;;  %s24_s21 = sadd.s32 1, %s1018_s7   ;;  %s1021_s14 = sld [smem:[#allocation20_spill]] }
  0x8f   : > { %p21_p3 = scmp.ge.s32.totalorder %s24_s21, 3   ;;  %s1022_s1 = sld [smem:[#allocation18_spill]] }
  0x90   : > { %s1023_s0 = smov %s636_s20 }
  0x91   :  { %23 = sbr.rel (!%p21_p3) target bundleno = 19 (0x13), region = 65 }
  0x94   : > { %s1024_s20 = smov %s1021_s14 }
  0x96   :  { %412 = vsyncpa [#allocation8], 1 }
  0x97   :  { %414 = vsyncpa [#allocation8 + $0x1], 1 }
  0x98   :  { %415 = vsyncmov [#allocation3] }
  0x9b   :  { %s416_s28 = vpop.sfrf %415 }
  0x9c   :  { %p494_p11 = scmp.ne.s32.totalorder %s416_s28, 0 }
  0x9e   :  { %420 = shalt.err (%p494_p11)  }
  0x9f   :  { %422 = vsyncmov [#allocation3 + $0x1] }
  0xa2   :  { %s423_s16 = vpop.sfrf %422 }
  0xa3   :  { %p495_p12 = scmp.ne.s32.totalorder %s423_s16, 0 }
  0xa5   :  { %427 = shalt.err (%p495_p12)  }

</bundles_post_ra>
